<compile_context>
chip_gen: v7x
topology: tpu7x:2x2x1
jax: 0.10.0
libtpu: 0.0.40
codegen_flags: <defaults>
</compile_context>

<pallas_src>
import jax
import jax.numpy as jnp
from jax.experimental import pallas as pl
from jax.experimental.pallas import tpu as pltpu


# ---------------------------------------------------------------------------
# Kernels
# ---------------------------------------------------------------------------

def _attention_pooling_kernel(x_ref, w_ref, o_ref):
    # Simple path: the whole time axis fits in one block.
    # x_ref: (BB, T, H) in its stored dtype; w_ref: (1, H); o_ref: (BB, H).
    x = x_ref[...]                                         # (BB, T, H), stored dtype
    w = w_ref[...].astype(x.dtype)                         # (1, H)

    # scores[b, t] = <x[b, t, :], w>  (bias dropped: softmax is shift-invariant).
    # Multiply in x.dtype (bf16 VALU on v6e/v7x), reduce over H in f32.
    scores = jnp.sum(x * w[None, :, :], axis=-1, dtype=jnp.float32)   # (BB, T)

    # Softmax over T, lane-dense, f32 stats.
    m = jnp.max(scores, axis=-1, keepdims=True)            # (BB, 1)
    p = jnp.exp(scores - m)                                 # (BB, T) f32
    denom = jnp.sum(p, axis=-1, keepdims=True)              # (BB, 1)

    # Unnormalized exp-weighted sum over T: multiply in x.dtype, accumulate in f32.
    acc = jnp.sum(p.astype(x.dtype)[:, :, None] * x, axis=1,
                  dtype=jnp.float32)                        # (BB, H)

    # EUP approx reciprocal + one Newton step (near-exact normalization).
    inv = pl.reciprocal(denom, approx=True)
    inv = inv * (2.0 - denom * inv)
    o_ref[...] = (acc * inv).astype(o_ref.dtype)


def _make_tsplit_kernel(t_actual, tt):
    """Online-softmax kernel for a (batch-block, time-block) grid."""

    def kernel(x_ref, w_ref, o_ref, m_sc, l_sc, acc_sc):
        j = pl.program_id(1)

        @pl.when(j == 0)
        def _():
            m_sc[...] = jnp.full_like(m_sc, -jnp.inf)
            l_sc[...] = jnp.zeros_like(l_sc)
            acc_sc[...] = jnp.zeros_like(acc_sc)

        x = x_ref[...]                                     # (BB, tt, H), stored dtype
        w = w_ref[...].astype(x.dtype)                     # (1, H)
        scores = jnp.sum(x * w[None, :, :], axis=-1,
                         dtype=jnp.float32)                # (BB, tt)

        if t_actual % tt != 0:
            # Mask padded time columns so they contribute nothing to the softmax.
            t_idx = j * tt + jax.lax.broadcasted_iota(jnp.int32, scores.shape, 1)
            scores = jnp.where(t_idx < t_actual, scores, -jnp.inf)

        m_prev = m_sc[...]                                                 # (BB, 1)
        m_new = jnp.maximum(m_prev, jnp.max(scores, axis=-1, keepdims=True))
        alpha = jnp.exp(m_prev - m_new)                                    # (BB, 1)
        p = jnp.exp(scores - m_new)                                        # (BB, tt)
        l_sc[...] = alpha * l_sc[...] + jnp.sum(p, axis=-1, keepdims=True)
        acc_sc[...] = alpha * acc_sc[...] + jnp.sum(
            p.astype(x.dtype)[:, :, None] * x, axis=1, dtype=jnp.float32)  # (BB, H)
        m_sc[...] = m_new

        @pl.when(j == pl.num_programs(1) - 1)
        def _():
            denom = l_sc[...]
            inv = pl.reciprocal(denom, approx=True)
            inv = inv * (2.0 - denom * inv)
            o_ref[...] = (acc_sc[...] * inv).astype(o_ref.dtype)

    return kernel


# ---------------------------------------------------------------------------
# Wrapper / tiling heuristics
# ---------------------------------------------------------------------------

def _round_up(x, m):
    return -(-x // m) * m


def _round_down(x, m):
    return (x // m) * m


def _vmem_capacity_bytes():
    try:
        return int(pltpu.get_tpu_info().vmem_capacity_bytes)
    except Exception:
        return 64 << 20  # conservative default (v7x-sized)


def _choose_batch_block(B, per_row_bytes, target_bytes, min_steps):
    """Batch rows per grid step (multiple of 8). Caller guarantees 8 rows fit."""
    bb_cap = _round_down(target_bytes // per_row_bytes, 8)        # VMEM-budget cap
    bb_for_steps = _round_up(max(1, -(-B // min_steps)), 8)       # aim for >= min_steps
    return max(8, min(bb_cap, bb_for_steps))


def attention_pooling(x, w, b=None, *, target_block_bytes=None):
    """x: (B, T, H); w: (1, H) = nn.Linear(H, 1).weight; b (1,) accepted but unused
    inside the kernel (softmax over dim=1 is invariant to the scalar bias).
    Returns (B, H) with the same dtype as x."""
    del b  # mathematically redundant for the forward pass
    B, T, H = x.shape
    itemsize = jnp.dtype(x.dtype).itemsize

    cap = _vmem_capacity_bytes()
    big_vmem = cap >= (96 << 20)                 # v5e/v6e (128 MiB) vs v7x (64 MiB)
    if target_block_bytes is None:
        target_block_bytes = (16 << 20) if big_vmem else (8 << 20)
    limit_cap = (96 << 20) if big_vmem else (48 << 20)
    min_steps = 4 if big_vmem else 8             # v7x: feed both TensorCores

    per_row_bytes = T * H * itemsize

    if 8 * per_row_bytes <= target_block_bytes:
        # ---------------- simple path: full T per block ----------------
        bb = _choose_batch_block(B, per_row_bytes, target_block_bytes, min_steps)
        B_pad = _round_up(B, bb)
        xp = x if B_pad == B else jnp.pad(x, ((0, B_pad - B), (0, 0), (0, 0)))
        n_blocks = B_pad // bb

        in_bytes = bb * T * H * itemsize
        out_bytes = bb * H * itemsize
        temps = 2 * bb * T * 4 + bb * H * 4 + bb * T * H * 4   # scores/p, acc, f32 temp
        vmem_limit = int(min(limit_cap,
                             max(32 << 20, 2 * in_bytes + 2 * out_bytes + temps)))

        out = pl.pallas_call(
            _attention_pooling_kernel,
            out_shape=jax.ShapeDtypeStruct((B_pad, H), x.dtype),
            grid_spec=pltpu.PrefetchScalarGridSpec(
                num_scalar_prefetch=0,
                grid=(n_blocks,),
                in_specs=[
                    pl.BlockSpec((bb, T, H), lambda i: (i, 0, 0)),
                    pl.BlockSpec((1, H), lambda i: (0, 0)),
                ],
                out_specs=pl.BlockSpec((bb, H), lambda i: (i, 0)),
            ),
            compiler_params=pltpu.CompilerParams(
                dimension_semantics=("parallel",),
                vmem_limit_bytes=vmem_limit,
            ),
        )(xp, w)
        return out[:B] if B_pad != B else out

    # ---------------- T-split path: online softmax over time blocks ----------------
    bb = 8
    tt = _round_down(max(target_block_bytes // (bb * H * itemsize), 8), 8)
    tt = min(tt, _round_up(T, 8))
    B_pad = _round_up(B, bb)
    T_pad = _round_up(T, tt)
    if B_pad != B or T_pad != T:
        xp = jnp.pad(x, ((0, B_pad - B), (0, T_pad - T), (0, 0)))
    else:
        xp = x
    n_b = B_pad // bb
    n_t = T_pad // tt

    in_bytes = bb * tt * H * itemsize
    out_bytes = bb * H * itemsize
    temps = 2 * bb * tt * 4 + 3 * bb * H * 4 + bb * tt * H * 4
    vmem_limit = int(min(limit_cap,
                         max(32 << 20, 2 * in_bytes + 2 * out_bytes + temps)))

    kernel = _make_tsplit_kernel(T, tt)
    out = pl.pallas_call(
        kernel,
        out_shape=jax.ShapeDtypeStruct((B_pad, H), x.dtype),
        grid_spec=pltpu.PrefetchScalarGridSpec(
            num_scalar_prefetch=0,
            grid=(n_b, n_t),
            in_specs=[
                pl.BlockSpec((bb, tt, H), lambda i, j: (i, j, 0)),
                pl.BlockSpec((1, H), lambda i, j: (0, 0)),
            ],
            out_specs=pl.BlockSpec((bb, H), lambda i, j: (i, 0)),
            scratch_shapes=[
                pltpu.VMEM((bb, 1), jnp.float32),   # running max
                pltpu.VMEM((bb, 1), jnp.float32),   # running denom
                pltpu.VMEM((bb, H), jnp.float32),   # running weighted sum
            ],
        ),
        compiler_params=pltpu.CompilerParams(
            dimension_semantics=("parallel", "arbitrary"),
            vmem_limit_bytes=vmem_limit,
        ),
    )(xp, w)
    return out[:B] if B_pad != B else out


# ---------------------------------------------------------------------------
# Pure-JAX reference (bias included, matching the PyTorch module)
# ---------------------------------------------------------------------------

def attention_pooling_ref(x, w, b):
    xf = x.astype(jnp.float32)
    scores = jnp.einsum("bth,oh->bto", xf, w.astype(jnp.float32)) + b  # (B, T, 1)
    attn = jax.nn.softmax(scores, axis=1)
    return jnp.sum(xf * attn, axis=1)                                   # (B, H)


if __name__ == "__main__":
    key = jax.random.PRNGKey(0)
    kx, kw, kb, kx2 = jax.random.split(key, 4)

    # --- Test 1: simple path, f32, module-sized shapes (B=2, T=8, H=32) ---
    B, T, H = 2, 8, 32
    x = jax.random.normal(kx, (B, T, H), dtype=jnp.float32)
    w = jax.random.normal(kw, (1, H), dtype=jnp.float32) * 0.1
    b = jax.random.normal(kb, (1,), dtype=jnp.float32) * 0.1

    out = jax.block_until_ready(attention_pooling(x, w, b))
    ref = attention_pooling_ref(x, w, b)
    assert out.shape == (B, H)
    assert jnp.allclose(out, ref, atol=1e-3, rtol=1e-3), (
        f"simple-path max abs err {float(jnp.max(jnp.abs(out - ref)))}")

    # --- Test 2: forced T-split path (online softmax), non-multiple T, f32 ---
    B2, T2, H2 = 4, 37, 128
    x2 = jax.random.normal(kx2, (B2, T2, H2), dtype=jnp.float32)
    w2 = jax.random.normal(kw, (1, H2), dtype=jnp.float32) * 0.1
    out2 = jax.block_until_ready(
        attention_pooling(x2, w2, b, target_block_bytes=64 * 1024))
    ref2 = attention_pooling_ref(x2, w2, b)
    assert out2.shape == (B2, H2)
    assert jnp.allclose(out2, ref2, atol=1e-3, rtol=1e-3), (
        f"tsplit-path max abs err {float(jnp.max(jnp.abs(out2 - ref2)))}")

    # --- Test 3: bf16 input on the simple path (halved HBM traffic, bf16 VALU) ---
    xb = x.astype(jnp.bfloat16)
    outb = jax.block_until_ready(attention_pooling(xb, w, b))
    refb = attention_pooling_ref(xb, w, b)
    assert outb.dtype == jnp.bfloat16 and outb.shape == (B, H)
    assert jnp.allclose(outb.astype(jnp.float32), refb, atol=3e-2, rtol=3e-2), (
        f"bf16-path max abs err {float(jnp.max(jnp.abs(outb.astype(jnp.float32) - refb)))}")

    print("KERNEL_OK")
</pallas_src>

<mosaic_0001>
module attributes {stable_mosaic.version = 11 : i64} {
  func.func @_attention_pooling_kernel(%arg0: i32, %arg1: memref<8x8x32xf32, #tpu.memory_space<vmem>>, %arg2: memref<1x32xf32, #tpu.memory_space<vmem>>, %arg3: memref<8x32xf32, #tpu.memory_space<vmem>>) attributes {dimension_semantics = [#tpu.dimension_semantics<parallel>], iteration_bounds = array<i64: 1>, scalar_prefetch = 0 : i64, scratch_operands = 0 : i64, tpu.core_type = #tpu.core_type<tc>, window_params = [{transform_indices = @transform_0, window_bounds = array<i64: 8, 8, 32>}, {pipeline_mode = #tpu.pipeline_mode<synchronous>, transform_indices = @transform_1, window_bounds = array<i64: 1, 32>}, {transform_indices = @transform_2, window_bounds = array<i64: 8, 32>}]} {
    %c0 = arith.constant 0 : index
    %c0_0 = arith.constant 0 : index
    %c0_1 = arith.constant 0 : index
    %0 = vector.load %arg1[%c0, %c0_0, %c0_1] : memref<8x8x32xf32, #tpu.memory_space<vmem>>, vector<8x8x32xf32>
    %c0_2 = arith.constant 0 : index
    %c0_3 = arith.constant 0 : index
    %1 = vector.load %arg2[%c0_2, %c0_3] : memref<1x32xf32, #tpu.memory_space<vmem>>, vector<1x32xf32>
    %2 = vector.shape_cast %1 : vector<1x32xf32> to vector<1x1x32xf32>
    %3 = vector.broadcast %2 : vector<1x1x32xf32> to vector<8x8x32xf32>
    %4 = arith.mulf %0, %3 : vector<8x8x32xf32>
    %cst = arith.constant dense<0.000000e+00> : vector<8x8xf32>
    %5 = vector.multi_reduction <add>, %4, %cst [2] : vector<8x8x32xf32> to vector<8x8xf32>
    %cst_4 = arith.constant dense<0xFF800000> : vector<8xf32>
    %6 = vector.multi_reduction <maximumf>, %5, %cst_4 [1] : vector<8x8xf32> to vector<8xf32>
    %7 = vector.shape_cast %6 : vector<8xf32> to vector<8x1xf32>
    %8 = vector.broadcast %7 : vector<8x1xf32> to vector<8x8xf32>
    %9 = arith.subf %5, %8 : vector<8x8xf32>
    %10 = math.exp %9 : vector<8x8xf32>
    %cst_5 = arith.constant dense<0.000000e+00> : vector<8xf32>
    %11 = vector.multi_reduction <add>, %10, %cst_5 [1] : vector<8x8xf32> to vector<8xf32>
    %12 = vector.shape_cast %11 : vector<8xf32> to vector<8x1xf32>
    %13 = vector.shape_cast %10 : vector<8x8xf32> to vector<8x8x1xf32>
    %14 = vector.broadcast %13 : vector<8x8x1xf32> to vector<8x8x32xf32>
    %15 = arith.mulf %14, %0 : vector<8x8x32xf32>
    %cst_6 = arith.constant dense<0.000000e+00> : vector<8x32xf32>
    %16 = vector.multi_reduction <add>, %15, %cst_6 [1] : vector<8x8x32xf32> to vector<8x32xf32>
    %17 = tpu.reciprocal %12 {approx = true} : vector<8x1xf32> -> vector<8x1xf32>
    %18 = arith.mulf %12, %17 : vector<8x1xf32>
    %cst_7 = arith.constant 2.000000e+00 : f32
    %19 = vector.broadcast %cst_7 : f32 to vector<8x1xf32>
    %20 = arith.subf %19, %18 : vector<8x1xf32>
    %21 = arith.mulf %17, %20 : vector<8x1xf32>
    %22 = vector.broadcast %21 : vector<8x1xf32> to vector<8x32xf32>
    %23 = arith.mulf %16, %22 : vector<8x32xf32>
    %c0_8 = arith.constant 0 : index
    %c0_9 = arith.constant 0 : index
    %24 = vector.load %arg3[%c0_8, %c0_9] : memref<8x32xf32, #tpu.memory_space<vmem>>, vector<8x32xf32>
    tpu.vector_store %arg3[%c0_8, %c0_9], %23 {strides = array<i32>} : memref<8x32xf32, #tpu.memory_space<vmem>>, vector<8x32xf32>,
    return
  }
  func.func @transform_0(%arg0: i32) -> (i32, i32, i32) {
    %c0_i32 = arith.constant 0 : i32
    %c0_i32_0 = arith.constant 0 : i32
    %c0_i32_1 = arith.constant 0 : i32
    return %arg0, %c0_i32, %c0_i32_0 : i32, i32, i32
  }
  func.func @transform_1(%arg0: i32) -> (i32, i32) {
    %c0_i32 = arith.constant 0 : i32
    %c0_i32_0 = arith.constant 0 : i32
    %c0_i32_1 = arith.constant 0 : i32
    return %c0_i32, %c0_i32_0 : i32, i32
  }
  func.func @transform_2(%arg0: i32) -> (i32, i32) {
    %c0_i32 = arith.constant 0 : i32
    %c0_i32_0 = arith.constant 0 : i32
    return %arg0, %c0_i32 : i32, i32
  }
}

</mosaic_0001>

<bundles_post_ra>
// kernel: tpu_custom_call.1
= control target key start
LH: loop header
LB: loop body
LE: loop exit
PB: predicated region body
PF: predicated region fallthrough
CT: control target
= control target key end

     0   :  { %7 = vsyncpa [#allocation3], 0  ;;  %s636_s0 = inlined_call_operand.hbm [shape: f32[8,8,32], index: 0, kind: input, shape index: {}]   ;;  %s637_s1 = inlined_call_operand.vmem [shape: f32[1,32], index: 1, kind: input, shape index: {}]   ;;  %s638_s2 = inlined_call_operand.hbm [shape: f32[8,32], index: 2, kind: output, shape index: {}]  }
   0x1   :  { %8 = vsyncpa [#allocation4], 0  ;;  %s488_s9 = smov [#allocation2]   ;;  %s440_s13 = scalar_lea.hbm %s636_s0, 1024 }
   0x2   :  { %s14_s10 = sshll.u32 %s488_s9, 4  ;;  %p441_p0 = scmp.ne.s32.totalorder %s636_s0, %s440_s13  ;;  %s15_s10 = int_to_ptr.vmem [resolvable:$true] %s14_s10 }
   0x3   :  { %p444_p1 = scmp.lt.u32.totalorder %s440_s13, %s636_s0 }
   0x5   :  { %p446_p2 = pnand %p444_p1, %p441_p0 }
   0x7   :  { %449 = shalt.err (!%p446_p2)
}
   0x8   :  { %s450_s18 = scalar_lea.vmem %s15_s10, 1024  ;;  %p455_p4 = scmp.lt.s32.totalorder %s15_s10, %s15_s10 }
   0x9   :  { %p451_p3 = scmp.ne.s32.totalorder %s15_s10, %s450_s18  ;;  %p456_p5 = scmp.lt.s32.totalorder %s450_s18, %s450_s18 }
   0xb   :  { %p457_p6 = por %p456_p5, %p455_p4 }
   0xd   :  { %p458_p7 = pnand %p457_p6, %p451_p3 }
   0xf   :  { %461 = shalt.err (!%p458_p7)
}
  0x10   :  { %s489_s19 = smov 128   ;;  %s490_s20 = smov 8  }
  0x11   :  { %20 = dma.hbm_to_vmem [thread:$0]  %s636_s0, 1024, %s15_s10, [#allocation3], %s489_s19, %s489_s19, %s490_s20  }
  0x12   :  { %484 = dma.done.wait [#allocation3], 1024  }
  0x13   :  { %485 = vsyncadd [#allocation3], 4294966272  ;;  %v520_v0 = vld [vmem:[#allocation2] sm:$0xff]  ;;  %vm49_vm0 = vcmask 261120   ;;  %v525_v2 = vld [vmem:[#allocation2 + $0x10] sm:$0xff]  ;;  %v82_v25 = vlaneseq  ;;  %vm116_vm1 = vcmask 1041409  }
  0x14   :  { %v414_v1 = vld [vmem:[%s637_s1] ss:$0 sm:$0xff]  ;;  %v529_v5 = vld [vmem:[#allocation2 + $0x8] sm:$0xff]  ;;  %v531_v6 = vld [vmem:[#allocation2 + $0x18] sm:$0xff]  ;;  %vm118_vm2 = vcmask 1042434   ;;  %vm120_vm3 = vcmask 1043459  }
  0x15   :  { %v41_v3 = vmul.f32 %v414_v1, %v520_v0  ;;  %v43_v4 = vmul.f32 %v414_v1, %v525_v2  ;;  %v42_v7 = vmul.f32 %v414_v1, %v529_v5  ;;  %v44_v8 = vmul.f32 %v414_v1, %v531_v6  ;;  %v535_v9 = vld [vmem:[#allocation2 + $0x20] sm:$0xff]  ;;  %v537_v10 = vld [vmem:[#allocation2 + $0x28] sm:$0xff]  ;;  %v545_v17 = vld [vmem:[#allocation2 + $0x30] sm:$0xff]  ;;  %s492_s0 = smov [#allocation5]  }
  0x16   :  { %v45_v15 = vmul.f32 %v414_v1, %v535_v9  ;;  %v46_v16 = vmul.f32 %v414_v1, %v537_v10  ;;  %v547_v18 = vld [vmem:[#allocation2 + $0x38] sm:$0xff]  ;;  %v47_v21 = vmul.f32 %v414_v1, %v545_v17  ;;  %v83_v26 = vand.u32 127, %v82_v25  ;;  %s405_s1 = sshll.u32 %s492_s0, 4  ;;  %s406_s1 = int_to_ptr.vmem [resolvable:$true] %s405_s1 }
  0x17   :  { %v50_v11 = vsel %vm49_vm0, %v41_v3, 0.0  ;;  %v56_v12 = vsel %vm49_vm0, %v43_v4, 0.0  ;;  %v53_v13 = vsel %vm49_vm0, %v42_v7, 0.0  ;;  %v59_v14 = vsel %vm49_vm0, %v44_v8, 0.0  ;;  %s462_s25 = scalar_lea.vmem %s406_s1, 128  ;;  %p467_p9 = scmp.lt.s32.totalorder %s406_s1, %s406_s1 }
  0x18   :  { %51 = vadd.xlane.f32.xlu0 %v50_v11  ;;  %57 = vadd.xlane.f32.xlu1 %v56_v12  ;;  %v62_v19 = vsel %vm49_vm0, %v45_v15, 0.0  ;;  %v65_v20 = vsel %vm49_vm0, %v46_v16, 0.0  ;;  %v48_v22 = vmul.f32 %v414_v1, %v547_v18  ;;  %v68_v23 = vsel %vm49_vm0, %v47_v21, 0.0  ;;  %p463_p8 = scmp.ne.s32.totalorder %s406_s1, %s462_s25  ;;  %p468_p10 = scmp.lt.s32.totalorder %s462_s25, %s462_s25 }
  0x19   :  { %v555_v27 = vshrl.u32 %v82_v25, 7  ;;  %vm122_vm4 = vcmask 1044484   ;;  %vm124_vm5 = vcmask 1045509   ;;  %vm126_vm6 = vcmask 1046534  }
  0x1a   :  { %v71_v24 = vsel %vm49_vm0, %v48_v22, 0.0  ;;  %vm128_vm7 = vcmask 1047559   ;;  %vm131_vm8 = vcmask 64512   ;;  %v491_v53 = vmov 0   ;;  %p469_p11 = por %p468_p10, %p467_p9 }
  0x1b   :  { %v558_v30 = vsub.s32 %v83_v26, %v555_v27  ;;  %421 = vset.pattern.permute.xlu0 %v491_v53  ;;  %420 = vset.pattern.permute.xlu1 %v491_v53  ;;  %v138_v54 = vsub.s32 0, %v555_v27  ;;  %v142_v55 = vsub.s32 1, %v555_v27  ;;  %v146_v56 = vsub.s32 2, %v555_v27 }
  0x1c   :  { %54 = vadd.xlane.f32.xlu0 %v53_v13  ;;  %60 = vadd.xlane.f32.xlu1 %v59_v14  ;;  %v150_v57 = vsub.s32 3, %v555_v27  ;;  %v154_v62 = vsub.s32 4, %v555_v27  ;;  %v158_v11 = vsub.s32 5, %v555_v27  ;;  %v162_v15 = vsub.s32 6, %v555_v27  ;;  %p470_p12 = pnand %p469_p11, %p463_p8 }
  0x1d   :  { %v166_v21 = vsub.s32 7, %v555_v27 }
  0x20   :  { %63 = vadd.xlane.f32.xlu0 %v62_v19  ;;  %66 = vadd.xlane.f32.xlu1 %v65_v20 }
  0x24   :  { %69 = vadd.xlane.f32.xlu0 %v68_v23  ;;  %72 = vadd.xlane.f32.xlu1 %v71_v24 }
  0xa5   :  { %v52_v28 = vpop.xlane.xlu0 %51  ;;  %v58_v29 = vpop.xlane.xlu1 %57 }
  0xa6   :  { %v87_v33 = vrot.slane %v52_v28, %v558_v30  ;;  %v95_v36 = vrot.slane %v58_v29, %v558_v30 }
  0xa9   :  { %v55_v31 = vpop.xlane.xlu0 %54  ;;  %v61_v32 = vpop.xlane.xlu1 %60 }
  0xaa   :  { %v91_v34 = vrot.slane %v55_v31, %v558_v30  ;;  %v99_v35 = vrot.slane %v61_v32, %v558_v30 }
  0xac   :  { %v117_v37 = vsel %vm116_vm1, %v91_v34, %v87_v33 }
  0xad   :  { %v119_v38 = vsel %vm118_vm2, %v95_v36, %v117_v37  ;;  %v64_v39 = vpop.xlane.xlu0 %63  ;;  %v67_v40 = vpop.xlane.xlu1 %66 }
  0xae   :  { %v121_v41 = vsel %vm120_vm3, %v99_v35, %v119_v38  ;;  %v103_v42 = vrot.slane %v64_v39, %v558_v30  ;;  %v107_v43 = vrot.slane %v67_v40, %v558_v30 }
  0xb0   :  { %v123_v44 = vsel %vm122_vm4, %v103_v42, %v121_v41 }
  0xb1   :  { %v70_v45 = vpop.xlane.xlu0 %69  ;;  %v73_v46 = vpop.xlane.xlu1 %72  ;;  %v125_v49 = vsel %vm124_vm5, %v107_v43, %v123_v44 }
  0xb2   :  { %v111_v47 = vrot.slane %v70_v45, %v558_v30  ;;  %v115_v48 = vrot.slane %v73_v46, %v558_v30 }
  0xb4   :  { %v127_v50 = vsel %vm126_vm6, %v111_v47, %v125_v49 }
  0xb5   :  { %v129_v51 = vsel %vm128_vm7, %v115_v48, %v127_v50 }
  0xb6   :  { %v132_v52 = vsel %vm131_vm8, %v129_v51, -inf }
  0xb7   :  { %133 = vmax.xlane.f32.xlu0 %v132_v52 }
 0x144   :  { %v134_v58 = vpop.xlane.xlu0 %133 }
 0x145   :  { %v139_v59 = vrot.slane %v134_v58, %v138_v54  ;;  %v143_v60 = vrot.slane %v134_v58, %v142_v55  ;;  %v147_v61 = vrot.slane %v134_v58, %v146_v56  ;;  %v151_v63 = vrot.slane %v134_v58, %v150_v57 }
 0x146   :  { %v155_v12 = vrot.slane %v134_v58, %v154_v62  ;;  %v159_v16 = vrot.slane %v134_v58, %v158_v11  ;;  %v163_v22 = vrot.slane %v134_v58, %v162_v15 }
 0x147   :  { %v176_v1 = vsub.f32 %v52_v28, %v139_v59  ;;  %v177_v3 = vsub.f32 %v55_v31, %v143_v60  ;;  %v178_v4 = vsub.f32 %v58_v29, %v147_v61  ;;  %v179_v13 = vsub.f32 %v61_v32, %v151_v63 }
 0x148   :  { %v180_v19 = vsub.f32 %v64_v39, %v155_v12  ;;  %v181_v23 = vsub.f32 %v67_v40, %v159_v16  ;;  %v167_v28 = vrot.slane %v134_v58, %v166_v21  ;;  %v182_v29 = vsub.f32 %v70_v45, %v163_v22 }
 0x149   :  { %v184_v7 = vmul.f32 1.442695, %v176_v1  ;;  %v186_v8 = vmul.f32 1.442695, %v177_v3  ;;  %v188_v14 = vmul.f32 1.442695, %v178_v4 }
 0x14a   :  { %v190_v20 = vmul.f32 1.442695, %v179_v13  ;;  %v192_v24 = vmul.f32 1.442695, %v180_v19  ;;  %v194_v31 = vmul.f32 1.442695, %v181_v23  ;;  %v183_v33 = vsub.f32 %v73_v46, %v167_v28 }
 0x14b   :  { %422 = vpow2.f32 %v184_v7  ;;  %v196_v34 = vmul.f32 1.442695, %v182_v29 }
 0x14c   :  { %424 = vpow2.f32 %v186_v8  ;;  %v198_v27 = vmul.f32 1.442695, %v183_v33 }
 0x14d   :  { %426 = vpow2.f32 %v188_v14 }
 0x14e   :  { %428 = vpow2.f32 %v190_v20 }
 0x14f   :  { %430 = vpow2.f32 %v192_v24 }
 0x150   :  { %432 = vpow2.f32 %v194_v31 }
 0x151   :  { %434 = vpow2.f32 %v196_v34 }
 0x152   :  { %436 = vpow2.f32 %v198_v27 }
 0x155   :  { %v423_v25 = vpop.eup %422 }
 0x156   :  { %v425_v26 = vpop.eup %424  ;;  %209 = vperm.xlu1 %420, %v423_v25  }
 0x157   :  { %212 = vperm.xlu0 %421, %v425_v26   ;;  %v427_v32 = vpop.eup %426 }
 0x158   :  { %v429_v35 = vpop.eup %428 }
 0x159   :  { %v431_v36 = vpop.eup %430 }
 0x15a   :  { %215 = vperm.xlu1 %420, %v427_v32   ;;  %v433_v37 = vpop.eup %432 }
 0x15b   :  { %v435_v38 = vpop.eup %434 }
 0x15c   :  { %v437_v39 = vpop.eup %436 }
 0x15e   :  { %218 = vperm.xlu1 %420, %v429_v35  }
 0x162   :  { %221 = vperm.xlu1 %420, %v431_v36  }
 0x166   :  { %224 = vperm.xlu1 %420, %v433_v37  }
 0x16a   :  { %227 = vperm.xlu1 %420, %v435_v38  }
 0x16e   :  { %230 = vperm.xlu1 %420, %v437_v39  }
 0x1d5   :  { %v210_v40 = vpop.permute.xlu1 %209 }
 0x1d6   :  { %v213_v44 = vpop.permute.xlu0 %212  ;;  %v235_v47 = vrot.slane %v210_v40, %v558_v30  ;;  %v283_v1 = vmul.f32 %v210_v40, %v520_v0 }
 0x1d7   :  { %v239_v46 = vrot.slane %v213_v44, %v558_v30  ;;  %v284_v3 = vmul.f32 %v213_v44, %v529_v5 }
 0x1d8   :  { %v291_v8 = vsel %vm49_vm0, %v283_v1, 0.0 }
 0x1d9   :  { %v216_v41 = vpop.permute.xlu1 %215  ;;  %v264_v52 = vsel %vm116_vm1, %v239_v46, %v235_v47  ;;  %v298_v12 = vsel %vm49_vm0, %v284_v3, 0.0  ;;  %v292_v15 = vrot.slane %v291_v8, 4 }
 0x1da   :  { %v243_v48 = vrot.slane %v216_v41, %v558_v30  ;;  %v285_v4 = vmul.f32 %v216_v41, %v525_v2  ;;  %v299_v2 = vrot.slane %v298_v12, 4 }
 0x1db   :  { %v293_v24 = vadd.f32 %v292_v15, %v291_v8 }
 0x1dc   :  { %v265_v54 = vsel %vm118_vm2, %v243_v48, %v264_v52  ;;  %v305_v13 = vsel %vm49_vm0, %v285_v4, 0.0  ;;  %v300_v23 = vadd.f32 %v299_v2, %v298_v12 }
 0x1dd   :  { %v219_v42 = vpop.permute.xlu1 %218  ;;  %v306_v16 = vrot.slane %v305_v13, 4  ;;  %v294_v33 = vrot.slane %v293_v24, 2 }
 0x1de   :  { %v247_v49 = vrot.slane %v219_v42, %v558_v30  ;;  %v286_v7 = vmul.f32 %v219_v42, %v531_v6  ;;  %v301_v32 = vrot.slane %v300_v23, 2 }
 0x1df   :  { %v307_v25 = vadd.f32 %v306_v16, %v305_v13  ;;  %v295_v40 = vadd.f32 %v294_v33, %v293_v24 }
 0x1e0   :  { %v266_v56 = vsel %vm120_vm3, %v247_v49, %v265_v54  ;;  %v312_v14 = vsel %vm49_vm0, %v286_v7, 0.0  ;;  %v302_v39 = vadd.f32 %v301_v32, %v300_v23 }
 0x1e1   :  { %v222_v43 = vpop.permute.xlu1 %221  ;;  %v308_v34 = vrot.slane %v307_v25, 2  ;;  %v296_v49 = vrot.slane %v295_v40, 1 }
 0x1e2   :  { %v251_v50 = vrot.slane %v222_v43, %v558_v30  ;;  %v303_v48 = vrot.slane %v302_v39, 1 }
 0x1e3   :  { %v309_v41 = vadd.f32 %v308_v34, %v307_v25 }
 0x1e4   :  { %v267_v57 = vsel %vm122_vm4, %v251_v50, %v266_v56 }
 0x1e5   :  { %v225_v45 = vpop.permute.xlu1 %224 }
 0x1e6   :  { %v255_v53 = vrot.slane %v225_v45, %v558_v30  ;;  %v288_v11 = vmul.f32 %v225_v45, %v537_v10 }
 0x1e8   :  { %v268_v60 = vsel %vm124_vm5, %v255_v53, %v267_v57  ;;  %v326_v19 = vsel %vm49_vm0, %v288_v11, 0.0 }
 0x1e9   :  { %v228_v51 = vpop.permute.xlu1 %227  ;;  %v327_v22 = vrot.slane %v326_v19, 4 }
 0x1ea   :  { %v259_v55 = vrot.slane %v228_v51, %v558_v30  ;;  %v289_v0 = vmul.f32 %v228_v51, %v545_v17  ;;  %v310_v51 = vrot.slane %v309_v41, 1 }
 0x1eb   :  { %v328_v31 = vadd.f32 %v327_v22, %v326_v19 }
 0x1ec   :  { %v269_v61 = vsel %vm126_vm6, %v259_v55, %v268_v60  ;;  %v333_v10 = vsel %vm49_vm0, %v289_v0, 0.0 }
 0x1ed   :  { %v231_v58 = vpop.permute.xlu1 %230  ;;  %v329_v38 = vrot.slane %v328_v31, 2 }
 0x1ee   :  { %v263_v59 = vrot.slane %v231_v58, %v558_v30  ;;  %v287_v30 = vmul.f32 %v222_v43, %v535_v9  ;;  %v290_v5 = vmul.f32 %v231_v58, %v547_v18  ;;  %v313_v9 = vrot.slane %v312_v14, 4 }
 0x1ef   :  { %v334_v18 = vrot.slane %v333_v10, 4  ;;  %v330_v47 = vadd.f32 %v329_v38, %v328_v31  ;;  %v304_v58 = vadd.f32 %v303_v48, %v302_v39 }
 0x1f0   :  { %v270_v62 = vsel %vm128_vm7, %v263_v59, %v269_v61  ;;  %v319_v6 = vsel %vm49_vm0, %v287_v30, 0.0  ;;  %v340_v20 = vsel %vm49_vm0, %v290_v5, 0.0  ;;  %v314_v26 = vadd.f32 %v313_v9, %v312_v14 }
 0x1f1   :  { %v272_v63 = vsel %vm131_vm8, %v270_v62, 0.0  ;;  %v320_v21 = vrot.slane %v319_v6, 4  ;;  %v341_v28 = vrot.slane %v340_v20, 4  ;;  %v335_v27 = vadd.f32 %v334_v18, %v333_v10 }
 0x1f2   :  { %273 = vadd.xlane.f32.xlu1 %v272_v63  ;;  %v315_v35 = vrot.slane %v314_v26, 2  ;;  %v331_v57 = vrot.slane %v330_v47, 1  ;;  %v297_v59 = vadd.f32 %v296_v49, %v295_v40  ;;  %v311_v61 = vadd.f32 %v310_v51, %v309_v41 }
 0x1f3   :  { %v321_v29 = vadd.f32 %v320_v21, %v319_v6  ;;  %v342_v36 = vadd.f32 %v341_v28, %v340_v20  ;;  %v336_v43 = vrot.slane %v335_v27, 2 }
 0x1f4   :  { %v316_v42 = vadd.f32 %v315_v35, %v314_v26  ;;  %v332_v11 = vadd.f32 %v331_v57, %v330_v47 }
 0x1f5   :  { %v322_v37 = vrot.slane %v321_v29, 2  ;;  %v343_v44 = vrot.slane %v342_v36, 2  ;;  %v337_v53 = vadd.f32 %v336_v43, %v335_v27 }
 0x1f6   :  { %v317_v52 = vrot.slane %v316_v42, 1 }
 0x1f7   :  { %v323_v46 = vadd.f32 %v322_v37, %v321_v29  ;;  %v344_v54 = vadd.f32 %v343_v44, %v342_v36  ;;  %v338_v63 = vrot.slane %v337_v53, 1 }
 0x1f8   :  { %v318_v62 = vadd.f32 %v317_v52, %v316_v42 }
 0x1f9   :  { %v324_v56 = vrot.slane %v323_v46, 1  ;;  %v345_v1 = vrot.slane %v344_v54, 1  ;;  %v339_v2 = vadd.f32 %v338_v63, %v337_v53 }
 0x1fb   :  { %v325_v30 = vadd.f32 %v324_v56, %v323_v46  ;;  %v346_v16 = vadd.f32 %v345_v1, %v344_v54 }
 0x27f   :  { %v274_v17 = vpop.xlane.xlu1 %273 }
 0x280   :  { %438 = vrcp.f32 %v274_v17 }
 0x28a   :  { %v439_v45 = vpop.eup %438 }
 0x28b   :  { %v348_v50 = vmul.f32 %v439_v45, %v274_v17 }
 0x28d   :  { %v349_v55 = vsub.f32 2.0, %v348_v50 }
 0x28f   :  { %v350_v60 = vmul.f32 %v439_v45, %v349_v55 }
 0x291   :  { %v352_v3 = vrot.slane %v350_v60, 1  ;;  %v353_v4 = vrot.slane %v350_v60, 2  ;;  %v354_v7 = vrot.slane %v350_v60, 3  ;;  %v355_v8 = vrot.slane %v350_v60, 4 }
 0x292   :  { %v356_v12 = vrot.slane %v350_v60, 5  ;;  %v357_v13 = vrot.slane %v350_v60, 6  ;;  %v358_v14 = vrot.slane %v350_v60, 7  ;;  %v367_v19 = vmul.f32 %v350_v60, %v297_v59 }
 0x293   :  { %v368_v0 = vmul.f32 %v352_v3, %v304_v58  ;;  %v369_v5 = vmul.f32 %v353_v4, %v311_v61  ;;  %v370_v15 = vmul.f32 %v354_v7, %v318_v62  ;;  %v371_v6 = vmul.f32 %v355_v8, %v325_v30 }
 0x294   :  { %v372_v9 = vmul.f32 %v356_v12, %v332_v11  ;;  %v373_v21 = vmul.f32 %v357_v13, %v339_v2  ;;  %v374_v22 = vmul.f32 %v358_v14, %v346_v16 }
 0x295   :  { %v383_v10 = vrot.slane %v368_v0, 7  ;;  %v385_v20 = vrot.slane %v369_v5, 6  ;;  %v387_v24 = vrot.slane %v370_v15, 5  ;;  %v389_v17 = vrot.slane %v371_v6, 4 }
 0x296   :  { %v391_v18 = vrot.slane %v372_v9, 3  ;;  %v393_v29 = vrot.slane %v373_v21, 2  ;;  %v395_v32 = vrot.slane %v374_v22, 1 }
 0x297   :  { %v384_v23 = vsel %vm116_vm1, %v383_v10, %v367_v19 }
 0x298   :  { %v386_v25 = vsel %vm118_vm2, %v385_v20, %v384_v23 }
 0x299   :  { %v388_v26 = vsel %vm120_vm3, %v387_v24, %v386_v25 }
 0x29a   :  { %v390_v28 = vsel %vm122_vm4, %v389_v17, %v388_v26 }
 0x29b   :  { %v392_v31 = vsel %vm124_vm5, %v391_v18, %v390_v28 }
 0x29c   :  { %v394_v33 = vsel %vm126_vm6, %v393_v29, %v392_v31 }
 0x29d   :  { %v396_v34 = vsel %vm128_vm7, %v395_v32, %v394_v33 }
 0x29e   :  { %398 = vst.msk [vmem:[#allocation5] sm:$0xff] %vm49_vm0, %v396_v34 }
 0x29f   :  { %473 = shalt.err (!%p470_p12)
}
 0x2a0   :  { %s474_s28 = scalar_lea.hbm %s638_s2, 128 }
 0x2a1   :  { %p475_p13 = scmp.ne.s32.totalorder %s638_s2, %s474_s28  ;;  %p478_p0 = scmp.lt.u32.totalorder %s474_s28, %s638_s2 }
 0x2a3   :  { %p480_p1 = pnand %p478_p0, %p475_p13 }
 0x2a5   :  { %483 = shalt.err (!%p480_p1)
}
 0x2a6   :  { %408 = dma.vmem_to_hbm [thread:$0]  %s406_s1, 128, %s638_s2, [#allocation4]  }
 0x2a7   :  { %486 = dma.done.wait [#allocation4], 128  }
 0x2a8   :  { %487 = vsyncadd [#allocation4], 4294967168 }
 0x2a9   :  { %412 = vsyncpa [#allocation3], 1 }
 0x2aa   :  { %413 = vsyncpa [#allocation4], 1 }

</bundles_post_ra>
